<compile_context>
chip_gen: v6e
topology: v6e:2x2x1
jax: 0.10.0
libtpu: 0.0.40
codegen_flags: <defaults>
</compile_context>

<pallas_src>
import jax
import jax.numpy as jnp
from jax.experimental import pallas as pl
from jax.experimental.pallas import tpu as pltpu


def _round_up(x, m):
    return (x + m - 1) // m * m


def _zero_index_map(ndim):
    return lambda n, j: (0,) * ndim


def _make_residual_kernel(tile_fn, n_params):
    """Kernel computing  out = tile_fn(x, *params) + x  on one (C, T) tile."""

    def kernel(*refs):
        x_ref = refs[0]
        param_refs = refs[1:1 + n_params]
        o_ref = refs[1 + n_params]

        x = x_ref[...]                                      # (C, T)
        fx = tile_fn(x, *(r[...] for r in param_refs))      # fn(x) on the tile
        o_ref[...] = (fx.astype(jnp.float32)
                      + x.astype(jnp.float32)).astype(o_ref.dtype)

    return kernel


def residual_pallas(tile_fn, x_nchw, params=(), *, col_tile=2048):
    """Pallas analogue of `Residual(fn)`:  y = fn(x) + x,  fused in one kernel.

    tile_fn : callable (x_tile[(C, T)], *param_arrays) -> (C, T); traced inside
              the kernel, so fn(x) and the residual add share a single HBM pass.
    x_nchw  : (N, C, H, W) input (PyTorch layout).
    params  : tuple of >=2-D arrays held resident in VMEM (constant block
              index => no per-step re-DMA).
    """
    N, C, H, W = x_nchw.shape
    HW = H * W
    x2 = x_nchw.reshape(N, C, HW)

    # Lane-dense spatial tiling: pad H*W to a multiple of 128 (unmasked full-
    # lane stores) and use large column tiles to amortize per-step overhead.
    T = min(col_tile, _round_up(HW, 128))
    HWp = _round_up(HW, T)
    if HWp != HW:
        x2 = jnp.pad(x2, ((0, 0), (0, 0), (0, HWp - HW)))

    grid = (N, HWp // T)

    # Batch dim squeezed out of the kernel view -> kernel sees (C, T).
    x_spec = pl.BlockSpec((pl.Squeezed(), C, T), lambda n, j: (n, 0, j))
    param_specs = [pl.BlockSpec(p.shape, _zero_index_map(p.ndim)) for p in params]
    out_spec = pl.BlockSpec((pl.Squeezed(), C, T), lambda n, j: (n, 0, j))

    # VMEM: double-buffered x + out tiles, resident params, plus headroom.
    tile_bytes = 4 * C * T * 4                     # 2 bufs x (in + out), f32
    param_bytes = sum(int(p.size) * p.dtype.itemsize for p in params)
    vmem_limit = int(min(max(2 * (tile_bytes + param_bytes), 8 << 20), 48 << 20))

    out = pl.pallas_call(
        _make_residual_kernel(tile_fn, len(params)),
        out_shape=jax.ShapeDtypeStruct((N, C, HWp), x_nchw.dtype),
        grid=grid,
        in_specs=[x_spec] + param_specs,
        out_specs=out_spec,
        compiler_params=pltpu.CompilerParams(
            dimension_semantics=("parallel", "parallel"),
            vmem_limit_bytes=vmem_limit,
        ),
    )(x2, *params)

    return out[:, :, :HW].reshape(N, C, H, W)


# ---------------------------------------------------------------------------
# Plain-JAX reference for correctness
# ---------------------------------------------------------------------------
def _reference_residual(x_nchw, w, b):
    N, C, H, W = x_nchw.shape
    x2 = x_nchw.reshape(N, C, H * W).astype(jnp.float32)
    h = jnp.einsum("oc,ncs->nos", w, x2) + b.reshape(1, C, 1)
    h = jax.nn.gelu(h)
    return (h + x2).reshape(N, C, H, W)


if __name__ == "__main__":
    key = jax.random.PRNGKey(0)
    kx, kw, kb = jax.random.split(key, 3)

    # Small shapes consistent with the module: batch=2, channels=4, spatial=16.
    N, C, H, W = 2, 4, 16, 16
    x = jax.random.normal(kx, (N, C, H, W), jnp.float32)
    w = jax.random.normal(kw, (C, C), jnp.float32) * 0.1
    b = jax.random.normal(kb, (C,), jnp.float32) * 0.1
    b2 = b.reshape(C, 1)     # broadcast over the lane (spatial) axis in-kernel

    def tile_fn(x_tile, w_tile, b_tile):
        # fn(x): 1x1 conv (channel mix) + bias + GELU on one (C, T) tile.
        h = jnp.dot(w_tile, x_tile, preferred_element_type=jnp.float32)
        return jax.nn.gelu(h + b_tile)

    out = residual_pallas(tile_fn, x, params=(w, b2))
    out = jax.block_until_ready(out)

    ref = jax.block_until_ready(_reference_residual(x, w, b))
    assert out.shape == (N, C, H, W), out.shape
    assert jnp.allclose(out, ref, atol=1e-4, rtol=1e-4), (
        float(jnp.max(jnp.abs(out - ref))))

    print("KERNEL_OK")
</pallas_src>

<mosaic_0001>
module attributes {stable_mosaic.version = 11 : i64} {
  func.func @kernel(%arg0: i32, %arg1: i32, %arg2: memref<1x4x256xf32, #tpu.memory_space<vmem>>, %arg3: memref<4x4xf32, #tpu.memory_space<vmem>>, %arg4: memref<4x1xf32, #tpu.memory_space<vmem>>, %arg5: memref<1x4x256xf32, #tpu.memory_space<vmem>>) attributes {dimension_semantics = [#tpu.dimension_semantics<parallel>, #tpu.dimension_semantics<parallel>], iteration_bounds = array<i64: 2, 1>, scalar_prefetch = 0 : i64, scratch_operands = 0 : i64, tpu.core_type = #tpu.core_type<tc>, window_params = [{transform_indices = @transform_0, window_bounds = array<i64: 1, 4, 256>}, {pipeline_mode = #tpu.pipeline_mode<synchronous>, transform_indices = @transform_1, window_bounds = array<i64: 4, 4>}, {pipeline_mode = #tpu.pipeline_mode<synchronous>, transform_indices = @transform_2, window_bounds = array<i64: 4, 1>}, {transform_indices = @transform_3, window_bounds = array<i64: 1, 4, 256>}]} {
    %c0 = arith.constant 0 : index
    %c0_0 = arith.constant 0 : index
    %c0_1 = arith.constant 0 : index
    %0 = vector.load %arg2[%c0, %c0_0, %c0_1] : memref<1x4x256xf32, #tpu.memory_space<vmem>>, vector<1x4x256xf32>
    %1 = vector.shape_cast %0 : vector<1x4x256xf32> to vector<4x256xf32>
    %c0_2 = arith.constant 0 : index
    %c0_3 = arith.constant 0 : index
    %2 = vector.load %arg3[%c0_2, %c0_3] : memref<4x4xf32, #tpu.memory_space<vmem>>, vector<4x4xf32>
    %c0_4 = arith.constant 0 : index
    %c0_5 = arith.constant 0 : index
    %3 = vector.load %arg4[%c0_4, %c0_5] : memref<4x1xf32, #tpu.memory_space<vmem>>, vector<4x1xf32>
    %cst = arith.constant dense<0.000000e+00> : vector<4x256xf32>
    %4 = tpu.matmul %2, %1, %cst {dimension_numbers = #tpu.dot_dimension_numbers<[1], [0], [0], [1], [0, 0, 1, 1], [], []>} : vector<4x4xf32>, vector<4x256xf32>, vector<4x256xf32> -> vector<4x256xf32>
    %5 = vector.broadcast %3 : vector<4x1xf32> to vector<4x256xf32>
    %6 = arith.addf %4, %5 : vector<4x256xf32>
    %7 = arith.mulf %6, %6 : vector<4x256xf32>
    %8 = arith.mulf %6, %7 : vector<4x256xf32>
    %cst_6 = arith.constant 4.471500e-02 : f32
    %9 = vector.broadcast %cst_6 : f32 to vector<4x256xf32>
    %10 = arith.mulf %9, %8 : vector<4x256xf32>
    %11 = arith.addf %6, %10 : vector<4x256xf32>
    %cst_7 = arith.constant 0.797884583 : f32
    %12 = vector.broadcast %cst_7 : f32 to vector<4x256xf32>
    %13 = arith.mulf %12, %11 : vector<4x256xf32>
    %14 = math.tanh %13 : vector<4x256xf32>
    %cst_8 = arith.constant 1.000000e+00 : f32
    %15 = vector.broadcast %cst_8 : f32 to vector<4x256xf32>
    %16 = arith.addf %15, %14 : vector<4x256xf32>
    %cst_9 = arith.constant 5.000000e-01 : f32
    %17 = vector.broadcast %cst_9 : f32 to vector<4x256xf32>
    %18 = arith.mulf %17, %16 : vector<4x256xf32>
    %19 = arith.mulf %6, %18 : vector<4x256xf32>
    %20 = arith.addf %19, %1 : vector<4x256xf32>
    %c0_10 = arith.constant 0 : index
    %c0_11 = arith.constant 0 : index
    %c0_12 = arith.constant 0 : index
    %21 = vector.load %arg5[%c0_10, %c0_11, %c0_12] : memref<1x4x256xf32, #tpu.memory_space<vmem>>, vector<1x4x256xf32>
    %22 = vector.shape_cast %21 : vector<1x4x256xf32> to vector<4x256xf32>
    %23 = vector.shape_cast %20 : vector<4x256xf32> to vector<1x4x256xf32>
    tpu.vector_store %arg5[%c0_10, %c0_11, %c0_12], %23 {strides = array<i32>} : memref<1x4x256xf32, #tpu.memory_space<vmem>>, vector<1x4x256xf32>,
    return
  }
  func.func @transform_0(%arg0: i32, %arg1: i32) -> (i32, i32, i32) {
    %c0_i32 = arith.constant 0 : i32
    %c0_i32_0 = arith.constant 0 : i32
    return %arg0, %c0_i32, %arg1 : i32, i32, i32
  }
  func.func @transform_1(%arg0: i32, %arg1: i32) -> (i32, i32) {
    %c0_i32 = arith.constant 0 : i32
    %c0_i32_0 = arith.constant 0 : i32
    %c0_i32_1 = arith.constant 0 : i32
    return %c0_i32, %c0_i32_0 : i32, i32
  }
  func.func @transform_2(%arg0: i32, %arg1: i32) -> (i32, i32) {
    %c0_i32 = arith.constant 0 : i32
    %c0_i32_0 = arith.constant 0 : i32
    %c0_i32_1 = arith.constant 0 : i32
    return %c0_i32, %c0_i32_0 : i32, i32
  }
  func.func @transform_3(%arg0: i32, %arg1: i32) -> (i32, i32, i32) {
    %c0_i32 = arith.constant 0 : i32
    %c0_i32_0 = arith.constant 0 : i32
    return %arg0, %c0_i32, %arg1 : i32, i32, i32
  }
}

</mosaic_0001>

<bundles_post_ra>
// kernel: tpu_custom_call.1
= control target key start
LH: loop header
LB: loop body
LE: loop exit
PB: predicated region body
PF: predicated region fallthrough
CT: control target
= control target key end

     0   :  { %8 = vsyncpa [#allocation3], 0  ;;  %s792_s0 = inlined_call_operand.hbm [shape: f32[2,4,256], index: 0, kind: input, shape index: {}]   ;;  %s793_s1 = inlined_call_operand.vmem [shape: f32[4,4], index: 1, kind: input, shape index: {}]   ;;  %s794_s2 = inlined_call_operand.vmem [shape: f32[4,1], index: 2, kind: input, shape index: {}]   ;;  %s795_s3 = inlined_call_operand.hbm [shape: f32[2,4,256], index: 3, kind: output, shape index: {}]  }
   0x1   :  { %10 = vsyncpa [#allocation3 + $0x1], 0 }
   0x2   :  { %11 = vsyncpa [#allocation4], 0 }
   0x3   :  { %13 = vsyncpa [#allocation4 + $0x1], 0  ;;  %s648_s12 = smov 0   ;;  %s650_s13 = smov 0  }
   0x4   :  { %s652_s14 = smov 0   ;;  %s654_s15 = smov 0  }
   0x5   :  { %s656_s16 = smov 0   ;;  %s658_s17 = smov 0  }
   0x6 LB: > { %s424_s18 = sadd.s32 4294967295, %s622_s17   ;;  %s425_s19 = sadd.s32 4294967294, %s622_s17   ;;  %s622_s17 = sphi %s658_s17, %s19_s17   ;;  %s618_s16 = sphi %s656_s16, %s807_s16   ;;  %s614_s15 = sphi %s654_s15, %s806_s15   ;;  %s610_s14 = sphi %s652_s14, %s805_s14   ;;  %s606_s13 = sphi %s650_s13, %s804_s13   ;;  %s602_s12 = sphi %s648_s12, %s803_s12  }
   0x7   : > { %s31_s20 = sadd.s32 1, %s618_s16  ;;  %s40_s21 = sadd.s32 1, %s610_s14 }
   0x8   : > { %p33_p0 = scmp.ge.s32.totalorder %s31_s20, 2  ;;  %p47_p1 = scmp.ne.s32.totalorder %s610_s14, %s606_s13 }
   0x9   : > { %p48_p2 = scmp.eq.s32.totalorder %s622_s17, 0  ;;  %p53_p3 = scmp.ne.s32.totalorder %s606_s13, %s602_s12 }
   0xa   : > { %s809_s20 = smov (%p33_p0, %s31_s20), 0  ;;  %p54_p5 = scmp.eq.s32.totalorder %s424_s18, 0 }
   0xb   : > { %p689_p4 = por %p48_p2, %p47_p1  ;;  %s35_s23 = ssub.s32 %s618_s16, %s809_s20 }
   0xc   : > { %p121_p6 = scmp.eq.s32.totalorder %s424_s18, 1  ;;  %p38_p7 = scmp.eq.s32.totalorder %s35_s23, 0 }
   0xd   : > { %p695_p8 = por %p54_p5, %p53_p3  ;;  %p127_p10 = scmp.eq.s32.totalorder %s425_s19, 1 }
   0xe   : > { %p699_p9 = por %p121_p6, %p47_p1  ;;  %p456_p13 = scmp.lt.s32.totalorder %s622_s17, 2 }
   0xf   : > { %s704_s26 = scalar_select %p38_p7, %s610_s14, %s40_s21  }
  0x10   : > { %p706_p11 = por %p127_p10, %p53_p3  ;;  %s153_s28 = sand.u32 1, %s610_s14  }
  0x11   : > { %s428_s29 = sshll.u32 %s153_s28, 3  ;;  %s442_s30 = sshll.u32 %s618_s16, 7 }
  0x12   : > { %s799_s27 = scalar_select %p706_p11, 1, 0 }
  0x13   : > { %s165_s6 = scalar_lea.hbm %s792_s0, %s442_s30  ;;  %s157_s7 = scalar_lea.vmem [#allocation2], %s428_s29 }
  0x14   : > { %s167_s8 = sshll.u32 %s157_s7, 4  ;;  %p719_p0 = pnand %p456_p13, %p689_p4  ;;  %s168_s8 = int_to_ptr.vmem [resolvable:$true] %s167_s8 }
  0x15   : > { %p431_p1 = scmp.ge.s32.totalorder %s622_s17, 1  ;;  %p172_p2 = scmp.lt.s32.totalorder %s622_s17, 3 }
  0x16   : > { %s154_s10 = scalar_lea.sflag [#allocation3], %s153_s28  ;;  %p516_p3 = pneg %p719_p0 }
  0x17   : > { %s527_s11 = scalar_lea.vmem %s168_s8, 128  ;;  %s624_s18 = smov [#allocation2]  }
  0x18   : > { %p528_p5 = scmp.ne.s32.totalorder %s168_s8, %s527_s11  ;;  %s532_s19 = sshll.u32 %s624_s18, 4  ;;  %s533_s19 = int_to_ptr.vmem [resolvable:$false] %s532_s19 }
  0x19   : > { %s534_s21 = scalar_lea.vmem %s533_s19, 256  ;;  %p535_p10 = scmp.lt.s32.totalorder %s168_s8, %s533_s19 }
  0x1a   : > { %p530_p6 = pnand %p528_p5, %p516_p3  ;;  %p536_p12 = scmp.lt.s32.totalorder %s534_s21, %s527_s11 }
  0x1c   : > { %p531_p7 = pneg %p530_p6  ;;  %p537_p4 = por %p536_p12, %p535_p10 }
  0x1e   : > { %p538_p13 = pnand %p537_p4, %p531_p7 }
  0x20   : > { %541 = shalt.err (!%p538_p13)
}
  0x21   : > { %451 = dma.hbm_to_vmem [thread:$0]  (!%p719_p0), %s165_s6, 128, %s168_s8, %s154_s10  }
  0x22   : > { %p173_p11 = pnand %p431_p1, %p172_p2 }
  0x23   : > { %s734_s22 = sand.u32 (!%p173_p11), 1, %s606_s13  }
  0x24   : > { %176 = sbr.rel (%p173_p11) target bundleno = 291 (0x123), region = 32  ;;  %s432_s23 = sshll.u32 (!%p173_p11), %s734_s22, 3 }
  0x25   : > { %s179_s28 = scalar_lea.sflag (!%p173_p11), [#allocation3], %s734_s22  ;;  %s182_s29 = scalar_lea.vmem (!%p173_p11), [#allocation2], %s432_s23 }
  0x29   : > { %593 = dma.done.wait (%p695_p8), %s179_s28, 128  }
  0x2a   : > { %595 = vsyncadd (%p695_p8), %s179_s28, 4294967168  ;;  %v625_v0 = vmov 0.0   ;;  %v626_v1 = vmov 0   ;;  %v207_v2 = vld [vmem:[%s182_s29] sm:$0xff]  ;;  %vm221_vm0 = vcmask 1043456   ;;  %vm217_vm1 = vcmask 31744  }
  0x2b   : > { %290 = vmatprep.mubr.f32.mxu0 %v625_v0  ;;  %508 = vset.pattern.permute.xlu0 %v626_v1  ;;  %v209_v3 = vld [vmem:[%s794_s2] sm:$0xf]  ;;  %v216_v4 = vcombine.high %v207_v2, %v207_v2  ;;  %s443_s24 = sshll.u32 %s614_s15, 7  ;;  %s204_s7 = scalar_lea.vmem [#allocation5], %s432_s23 }
  0x2c   : > { %212 = vperm.xlu0 %508, %v209_v3   ;;  %v208_v5 = vld [vmem:[%s793_s1] sm:$0xf]  ;;  %s340_s8 = sshll.u32 %s204_s7, 4  ;;  %s338_s11 = scalar_lea.hbm %s795_s3, %s443_s24  ;;  %s341_s8 = int_to_ptr.vmem [resolvable:$true] %s340_s8 }
  0x2d   : > { %434 = vmatprep.subr.msk.mxu0 %vm221_vm0, %v216_v4  ;;  %s324_s18 = scalar_lea.sflag [#allocation4], %s734_s22  ;;  %s542_s19 = scalar_lea.vmem %s341_s8, 128 }
  0x2e   : > { %435 = vmatpush1.msk.msra.mxu0 %vm221_vm0, %v207_v2  ;;  %p543_p8 = scmp.ne.s32.totalorder %s341_s8, %s542_s19  ;;  %s627_s21 = smov [#allocation5]  }
  0x2f   : > { %436 = vmatmul.mubr.msk.f32.vlgmr.msra.gmra.mxu0 %vm217_vm1, %v208_v5  ;;  %s546_s15 = sshll.u32 %s627_s21, 4  ;;  %s547_s15 = int_to_ptr.vmem [resolvable:$false] %s546_s15 }
  0x30   : > { %p544_p11 = pnand %p543_p8, %p699_p9  ;;  %s548_s23 = scalar_lea.vmem %s547_s15, 256 }
  0x31   : > { %p549_p0 = scmp.lt.s32.totalorder %s341_s8, %s547_s15  ;;  %p550_p1 = scmp.lt.s32.totalorder %s548_s23, %s542_s19 }
  0x32   : > { %p545_p12 = pneg %p544_p11 }
  0x33   : > { %p551_p2 = por %p550_p1, %p549_p0 }
  0x35   : > { %p552_p3 = pnand %p551_p2, %p545_p12 }
  0xa7   : > { %v213_v6 = vpop.permute.xlu0 %212 }
  0xef   : > { %v292_v7 = vpop.f32.mrf.mxu0 }
  0xf0   : > { %v293_v8 = vadd.f32 %v292_v7, %v213_v6 }
  0xf1   : > { %v294_v9 = vpop.f32.mrf.mxu0 }
  0xf2   : > { %v297_v10 = vmul.f32 %v293_v8, %v293_v8  ;;  %v295_v11 = vadd.f32 %v294_v9, %v213_v6 }
  0xf4   : > { %v299_v12 = vmul.f32 %v297_v10, %v293_v8  ;;  %v298_v13 = vmul.f32 %v295_v11, %v295_v11 }
  0xf6   : > { %v301_v14 = vmul.f32 0.044715, %v299_v12  ;;  %v300_v15 = vmul.f32 %v298_v13, %v295_v11 }
  0xf8   : > { %v303_v16 = vadd.f32 %v301_v14, %v293_v8  ;;  %v302_v17 = vmul.f32 0.044715, %v300_v15 }
  0xfa   : > { %v305_v18 = vmul.f32 0.7978846, %v303_v16  ;;  %v304_v19 = vadd.f32 %v302_v17, %v295_v11 }
  0xfc   : > { %510 = vtanh.f32 %v305_v18  ;;  %v306_v20 = vmul.f32 0.7978846, %v304_v19 }
  0xfe   : > { %512 = vtanh.f32 %v306_v20 }
 0x109   : > { %v511_v21 = vpop.eup %510 }
 0x10a   : > { %v309_v22 = vadd.f32 1.0, %v511_v21 }
 0x10b   : > { %v513_v23 = vpop.eup %512 }
 0x10c   : > { %v311_v24 = vmul.f32 0.5, %v309_v22  ;;  %v310_v25 = vadd.f32 1.0, %v513_v23 }
 0x10e   : > { %v313_v26 = vmul.f32 %v311_v24, %v293_v8  ;;  %v312_v27 = vmul.f32 0.5, %v310_v25 }
 0x110   : > { %v314_v28 = vmul.f32 %v312_v27, %v295_v11  ;;  %v316_v29 = vadd.f32 %v313_v26, %v207_v2 }
 0x112   : > { %v317_v30 = vadd.f32 %v314_v28, %v216_v4 }
 0x114   : > { %v320_v31 = vcombine.low %v316_v29, %v317_v30 }
 0x116   : > { %322 = vst [vmem:[%s204_s7] sm:$0xff] %v320_v31 }
 0x117   : > { %555 = shalt.err (!%p552_p3)
}
 0x118   : > { %s556_s28 = scalar_lea.hbm %s338_s11, 128  ;;  %s560_s30 = scalar_lea.hbm %s795_s3, 256 }
 0x119   : > { %p557_p5 = scmp.ne.s32.totalorder %s338_s11, %s556_s28  ;;  %p561_p10 = scmp.lt.s32.totalorder %s338_s11, %s795_s3 }
 0x11a   : > { %p562_p4 = scmp.lt.s32.totalorder %s560_s30, %s556_s28 }
 0x11b   : > { %p558_p6 = pnand %p557_p5, %p699_p9 }
 0x11c   : > { %p563_p13 = por %p562_p4, %p561_p10 }
 0x11d   : > { %p559_p7 = pneg %p558_p6 }
 0x11f   : > { %p564_p8 = pnand %p563_p13, %p559_p7 }
 0x121   : > { %567 = shalt.err (!%p564_p8)
}
 0x122   : > { %446 = dma.vmem_to_hbm [thread:$0]  (%p699_p9), %s341_s8, 128, %s338_s11, %s324_s18  }
 0x123 PF: > { %s352_s6 = sand.u32 1, %s602_s12   ;;  %p801_p11 = scmp.ne.s32.totalorder %s799_s27, 0 }
 0x124   : > { %p802_p12 = scmp.ge.s32.totalorder %s622_s17, 2  ;;  %s353_s24 = scalar_lea.sflag [#allocation4], %s352_s6 }
 0x126   : > { %p453_p0 = pnand %p802_p12, %p801_p11 }
 0x128   : > { %p454_p1 = pneg %p453_p0 }
 0x12a   : > { %597 = dma.done.wait (%p454_p1), %s353_s24, 128  }
 0x12b   : > { %599 = vsyncadd (%p454_p1), %s353_s24, 4294967168  ;;  %s19_s17 = sadd.s32 1, %s622_s17   ;;  %s803_s12 = smov %s606_s13 }
 0x12c   : > { %p16_p2 = scmp.ge.s32.totalorder %s19_s17, 4   ;;  %s804_s13 = smov %s610_s14 }
 0x12d   : > { %s805_s14 = smov %s704_s26  ;;  %s806_s15 = smov %s618_s16 }
 0x12e   : > { %s807_s16 = smov %s809_s20  ;;  %18 = sbr.rel (!%p16_p2) target bundleno = 6 (0x6), region = 77 }
 0x133   :  { %358 = vsyncpa [#allocation3], 1 }
 0x134   :  { %360 = vsyncpa [#allocation3 + $0x1], 1 }
 0x135   :  { %361 = vsyncpa [#allocation4], 1 }
 0x136   :  { %363 = vsyncpa [#allocation4 + $0x1], 1 }

</bundles_post_ra>
